<compile_context>
chip_gen: v7x
topology: tpu7x:2x2x1
jax: 0.10.0
libtpu: 0.0.40
codegen_flags: <defaults>
</compile_context>

<pallas_src>
import functools

import jax
import jax.numpy as jnp
from jax.experimental import pallas as pl
from jax.experimental.pallas import tpu as pltpu


_LANE = 128      # lane width of a vreg (last dim)
_SUBLANE = 8     # f32 sublane count (second-to-last dim)

# If the total padded weight footprint is below this, use the single fused
# kernel (launch/DMA-latency-bound regime); otherwise stream weights per layer.
_FUSED_WEIGHT_BUDGET_BYTES = 4 * 1024 * 1024


def _round_up(x, m):
    return (x + m - 1) // m * m


def _pick_tile(dim, max_tile, multiple):
    """Largest divisor of `dim` that is <= max_tile and a multiple of `multiple`.

    Assumes dim % multiple == 0 when dim > max_tile (guaranteed by padding).
    """
    if dim <= max_tile:
        return dim
    t = (max_tile // multiple) * multiple
    while dim % t:
        t -= multiple
    return t


# -----------------------------------------------------------------------------
# Tiled, weight-streaming Linear + bias + ReLU  (one pallas_call per layer).
# -----------------------------------------------------------------------------
def _linear_relu_kernel(x_ref, w_ref, b_ref, o_ref, acc_ref):
    k = pl.program_id(1)

    @pl.when(k == 0)
    def _init():
        acc_ref[...] = jnp.zeros_like(acc_ref)

    acc_ref[...] += jnp.dot(
        x_ref[...].astype(w_ref.dtype), w_ref[...],
        preferred_element_type=jnp.float32)

    @pl.when(k == pl.num_programs(1) - 1)
    def _finalize():
        o_ref[...] = jnp.maximum(acc_ref[...] + b_ref[...], 0.0).astype(o_ref.dtype)


def _linear_relu_tiled(x_p, w_p, b_p, *, tn_max=512, tk_max=1024):
    """relu(x_p @ w_p + b_p) with weights streamed over an (N, K) grid."""
    B_pad, K_pad = x_p.shape
    Kw, N_pad = w_p.shape
    assert Kw == K_pad, (Kw, K_pad)

    tk = _pick_tile(K_pad, tk_max, _LANE)
    tn = _pick_tile(N_pad, tn_max, _LANE)
    grid = (N_pad // tn, K_pad // tk)

    return pl.pallas_call(
        _linear_relu_kernel,
        out_shape=jax.ShapeDtypeStruct((B_pad, N_pad), x_p.dtype),
        grid_spec=pltpu.PrefetchScalarGridSpec(
            num_scalar_prefetch=0,
            grid=grid,
            in_specs=[
                pl.BlockSpec((B_pad, tk), lambda n, k: (0, k)),   # activations
                pl.BlockSpec((tk, tn), lambda n, k: (k, n)),      # weight tile
                pl.BlockSpec((1, tn), lambda n, k: (0, n)),       # bias tile
            ],
            out_specs=pl.BlockSpec((B_pad, tn), lambda n, k: (0, n)),
            scratch_shapes=[pltpu.VMEM((B_pad, tn), jnp.float32)],
        ),
        compiler_params=pltpu.CompilerParams(
            # N tiles are independent (megacore / v7x 2-TC sharding);
            # K is the reduction axis with the resident accumulator.
            dimension_semantics=("parallel", "arbitrary"),
        ),
    )(x_p, w_p, b_p)


# -----------------------------------------------------------------------------
# Fully fused small-model kernel: every layer in one pallas_call,
# intermediate activations live in vregs (no VMEM scratch round-trip).
# -----------------------------------------------------------------------------
def _make_fused_kernel(num_layers):
    def kernel(*args):
        x_ref = args[0]
        wb = args[1:1 + 2 * num_layers]
        o_ref = args[1 + 2 * num_layers]

        h = x_ref[...]
        for l in range(num_layers):
            w_ref = wb[2 * l]
            b_ref = wb[2 * l + 1]
            acc = jnp.dot(h.astype(w_ref.dtype), w_ref[...],
                          preferred_element_type=jnp.float32)
            h = jnp.maximum(acc + b_ref[...], 0.0)   # stays in vregs
        o_ref[...] = h.astype(o_ref.dtype)

    return kernel


def _fused_mlp_small(x_p, padded_params):
    B_pad, _ = x_p.shape
    num_layers = len(padded_params)
    N_last = padded_params[-1][0].shape[1]

    inputs = [x_p]
    in_specs = [pl.BlockSpec(x_p.shape, lambda i: (0, 0))]
    for (w_p, b_p) in padded_params:
        inputs += [w_p, b_p]
        in_specs += [pl.BlockSpec(w_p.shape, lambda i: (0, 0)),
                     pl.BlockSpec(b_p.shape, lambda i: (0, 0))]

    return pl.pallas_call(
        _make_fused_kernel(num_layers),
        out_shape=jax.ShapeDtypeStruct((B_pad, N_last), x_p.dtype),
        grid_spec=pltpu.PrefetchScalarGridSpec(
            num_scalar_prefetch=0,
            grid=(1,),
            in_specs=in_specs,
            out_specs=pl.BlockSpec((B_pad, N_last), lambda i: (0, 0)),
        ),
        compiler_params=pltpu.CompilerParams(
            dimension_semantics=("arbitrary",),
        ),
    )(*inputs)


# -----------------------------------------------------------------------------
# Parameter preparation (run ONCE, outside the per-step forward).
# -----------------------------------------------------------------------------
def prepare_params(params, weight_dtype=None):
    """Zero-pad params once.  params: list of (w_t, b) with w_t = (fan_in, fan_out).

    - N (output) dims padded to 128 (lane-dense stores / MXU columns).
    - The first layer's K (= in_feat) padded only to a sublane multiple of 8.
    - Hidden K dims are already 128-padded (they equal the previous layer's N).
    - weight_dtype=jnp.bfloat16 optionally halves HBM weight traffic
      (numerics tradeoff vs PyTorch f32); bias stays f32 for the epilogue.
    """
    padded = []
    for l, (w_t, b) in enumerate(params):
        k, n = w_t.shape
        kp = _round_up(k, _SUBLANE) if l == 0 else _round_up(k, _LANE)
        np_ = _round_up(n, _LANE)
        wdt = weight_dtype if weight_dtype is not None else w_t.dtype
        w_p = jnp.zeros((kp, np_), wdt).at[:k, :n].set(w_t.astype(wdt))
        b_p = jnp.zeros((1, np_), jnp.float32).at[0, :n].set(b.astype(jnp.float32))
        padded.append((w_p, b_p))
    return tuple(padded)


# -----------------------------------------------------------------------------
# Forward pass.
# -----------------------------------------------------------------------------
@functools.partial(
    jax.jit, static_argnames=("out_feat", "force_tiled", "tn_max", "tk_max"))
def toy_model_forward(x, padded_params, *, out_feat, force_tiled=False,
                      tn_max=512, tk_max=1024):
    B, in_feat = x.shape
    K0 = padded_params[0][0].shape[0]
    B_pad = _round_up(max(B, _SUBLANE), _SUBLANE)

    # Only the (tiny) activation is padded per call; weights were padded once.
    x_p = jnp.zeros((B_pad, K0), x.dtype).at[:B, :in_feat].set(x)

    total_w_bytes = sum(int(w.size) * w.dtype.itemsize for (w, _) in padded_params)
    if (not force_tiled) and total_w_bytes <= _FUSED_WEIGHT_BUDGET_BYTES:
        out_p = _fused_mlp_small(x_p, padded_params)
    else:
        h = x_p
        for (w_p, b_p) in padded_params:
            h = _linear_relu_tiled(h, w_p, b_p, tn_max=tn_max, tk_max=tk_max)
        out_p = h

    return out_p[:B, :out_feat]


# -----------------------------------------------------------------------------
# Param init mirroring nn.Linear defaults, and a pure-JAX reference.
# -----------------------------------------------------------------------------
def init_toy_model_params(key, in_feat, hidden_feat, num_hidden, out_feat,
                          dtype=jnp.float32):
    dims = [(in_feat, hidden_feat)]
    dims += [(hidden_feat, hidden_feat)] * num_hidden
    dims += [(hidden_feat, out_feat)]

    params = []
    for (fan_in, fan_out) in dims:
        key, kw, kb = jax.random.split(key, 3)
        bound = 1.0 / jnp.sqrt(jnp.asarray(fan_in, dtype=jnp.float32))
        # PyTorch Linear default init: U(-1/sqrt(fan_in), 1/sqrt(fan_in))
        w_t = jax.random.uniform(kw, (fan_in, fan_out), dtype=dtype,
                                 minval=-bound, maxval=bound)
        b = jax.random.uniform(kb, (fan_out,), dtype=dtype,
                               minval=-bound, maxval=bound)
        params.append((w_t, b))
    return params


def toy_model_ref(x, params):
    h = x
    for w_t, b in params:
        h = jnp.maximum(h @ w_t + b, 0.0)
    return h


if __name__ == "__main__":
    # Small shapes consistent with the module (hidden scaled down from 5000):
    in_feat, hidden_feat, num_hidden, out_feat = 10, 256, 2, 5
    batch = 8

    key = jax.random.PRNGKey(0)
    key, kx = jax.random.split(key)
    x = jax.random.normal(kx, (batch, in_feat), dtype=jnp.float32)

    params = init_toy_model_params(key, in_feat, hidden_feat, num_hidden, out_feat)
    ref = toy_model_ref(x, params)

    # Pad params once (hoisted out of the per-call path).
    pp = prepare_params(params)

    # 1) Fused small-model path (default at this size).
    out_fused = jax.block_until_ready(toy_model_forward(x, pp, out_feat=out_feat))
    assert out_fused.shape == (batch, out_feat), out_fused.shape
    assert jnp.allclose(out_fused, ref, atol=1e-5, rtol=1e-5), "fused mismatch"

    # 2) Tiled weight-streaming path (the real-shape design), forced with small
    #    tiles so the (N parallel, K arbitrary) grid + accumulator is exercised.
    out_tiled = jax.block_until_ready(
        toy_model_forward(x, pp, out_feat=out_feat, force_tiled=True,
                          tn_max=128, tk_max=128))
    assert out_tiled.shape == (batch, out_feat), out_tiled.shape
    assert jnp.allclose(out_tiled, ref, atol=1e-5, rtol=1e-5), "tiled mismatch"

    # 3) Optional bf16-weight variant (HBM-bandwidth optimization; f32 accum).
    pp_bf16 = prepare_params(params, weight_dtype=jnp.bfloat16)
    out_bf16 = jax.block_until_ready(toy_model_forward(x, pp_bf16, out_feat=out_feat))
    assert jnp.allclose(out_bf16, ref, atol=5e-2, rtol=5e-2), "bf16 mismatch"

    print("KERNEL_OK")
</pallas_src>

<mosaic_0001>
module attributes {stable_mosaic.version = 11 : i64} {
  func.func @kernel(%arg0: i32, %arg1: memref<8x16xf32, #tpu.memory_space<vmem>>, %arg2: memref<16x256xf32, #tpu.memory_space<vmem>>, %arg3: memref<1x256xf32, #tpu.memory_space<vmem>>, %arg4: memref<256x256xf32, #tpu.memory_space<vmem>>, %arg5: memref<1x256xf32, #tpu.memory_space<vmem>>, %arg6: memref<256x256xf32, #tpu.memory_space<vmem>>, %arg7: memref<1x256xf32, #tpu.memory_space<vmem>>, %arg8: memref<256x128xf32, #tpu.memory_space<vmem>>, %arg9: memref<1x128xf32, #tpu.memory_space<vmem>>, %arg10: memref<8x128xf32, #tpu.memory_space<vmem>>) attributes {dimension_semantics = [#tpu.dimension_semantics<arbitrary>], iteration_bounds = array<i64: 1>, scalar_prefetch = 0 : i64, scratch_operands = 0 : i64, tpu.core_type = #tpu.core_type<tc>, window_params = [{pipeline_mode = #tpu.pipeline_mode<synchronous>, transform_indices = @transform_0, window_bounds = array<i64: 8, 16>}, {pipeline_mode = #tpu.pipeline_mode<synchronous>, transform_indices = @transform_1, window_bounds = array<i64: 16, 256>}, {pipeline_mode = #tpu.pipeline_mode<synchronous>, transform_indices = @transform_2, window_bounds = array<i64: 1, 256>}, {pipeline_mode = #tpu.pipeline_mode<synchronous>, transform_indices = @transform_3, window_bounds = array<i64: 256, 256>}, {pipeline_mode = #tpu.pipeline_mode<synchronous>, transform_indices = @transform_4, window_bounds = array<i64: 1, 256>}, {pipeline_mode = #tpu.pipeline_mode<synchronous>, transform_indices = @transform_5, window_bounds = array<i64: 256, 256>}, {pipeline_mode = #tpu.pipeline_mode<synchronous>, transform_indices = @transform_6, window_bounds = array<i64: 1, 256>}, {pipeline_mode = #tpu.pipeline_mode<synchronous>, transform_indices = @transform_7, window_bounds = array<i64: 256, 128>}, {pipeline_mode = #tpu.pipeline_mode<synchronous>, transform_indices = @transform_8, window_bounds = array<i64: 1, 128>}, {pipeline_mode = #tpu.pipeline_mode<synchronous>, transform_indices = @transform_9, window_bounds = array<i64: 8, 128>}]} {
    %c0 = arith.constant 0 : index
    %c0_0 = arith.constant 0 : index
    %0 = vector.load %arg1[%c0, %c0_0] : memref<8x16xf32, #tpu.memory_space<vmem>>, vector<8x16xf32>
    %c0_1 = arith.constant 0 : index
    %c0_2 = arith.constant 0 : index
    %1 = vector.load %arg2[%c0_1, %c0_2] : memref<16x256xf32, #tpu.memory_space<vmem>>, vector<16x256xf32>
    %cst = arith.constant dense<0.000000e+00> : vector<8x256xf32>
    %2 = tpu.matmul %0, %1, %cst {dimension_numbers = #tpu.dot_dimension_numbers<[1], [0], [0], [1], [0, 0, 1, 1], [], []>} : vector<8x16xf32>, vector<16x256xf32>, vector<8x256xf32> -> vector<8x256xf32>
    %c0_3 = arith.constant 0 : index
    %c0_4 = arith.constant 0 : index
    %3 = vector.load %arg3[%c0_3, %c0_4] : memref<1x256xf32, #tpu.memory_space<vmem>>, vector<1x256xf32>
    %4 = vector.broadcast %3 : vector<1x256xf32> to vector<8x256xf32>
    %5 = arith.addf %2, %4 : vector<8x256xf32>
    %cst_5 = arith.constant 0.000000e+00 : f32
    %6 = vector.broadcast %cst_5 : f32 to vector<8x256xf32>
    %7 = arith.maximumf %5, %6 : vector<8x256xf32>
    %c0_6 = arith.constant 0 : index
    %c0_7 = arith.constant 0 : index
    %8 = vector.load %arg4[%c0_6, %c0_7] : memref<256x256xf32, #tpu.memory_space<vmem>>, vector<256x256xf32>
    %cst_8 = arith.constant dense<0.000000e+00> : vector<8x256xf32>
    %9 = tpu.matmul %7, %8, %cst_8 {dimension_numbers = #tpu.dot_dimension_numbers<[1], [0], [0], [1], [0, 0, 1, 1], [], []>} : vector<8x256xf32>, vector<256x256xf32>, vector<8x256xf32> -> vector<8x256xf32>
    %c0_9 = arith.constant 0 : index
    %c0_10 = arith.constant 0 : index
    %10 = vector.load %arg5[%c0_9, %c0_10] : memref<1x256xf32, #tpu.memory_space<vmem>>, vector<1x256xf32>
    %11 = vector.broadcast %10 : vector<1x256xf32> to vector<8x256xf32>
    %12 = arith.addf %9, %11 : vector<8x256xf32>
    %cst_11 = arith.constant 0.000000e+00 : f32
    %13 = vector.broadcast %cst_11 : f32 to vector<8x256xf32>
    %14 = arith.maximumf %12, %13 : vector<8x256xf32>
    %c0_12 = arith.constant 0 : index
    %c0_13 = arith.constant 0 : index
    %15 = vector.load %arg6[%c0_12, %c0_13] : memref<256x256xf32, #tpu.memory_space<vmem>>, vector<256x256xf32>
    %cst_14 = arith.constant dense<0.000000e+00> : vector<8x256xf32>
    %16 = tpu.matmul %14, %15, %cst_14 {dimension_numbers = #tpu.dot_dimension_numbers<[1], [0], [0], [1], [0, 0, 1, 1], [], []>} : vector<8x256xf32>, vector<256x256xf32>, vector<8x256xf32> -> vector<8x256xf32>
    %c0_15 = arith.constant 0 : index
    %c0_16 = arith.constant 0 : index
    %17 = vector.load %arg7[%c0_15, %c0_16] : memref<1x256xf32, #tpu.memory_space<vmem>>, vector<1x256xf32>
    %18 = vector.broadcast %17 : vector<1x256xf32> to vector<8x256xf32>
    %19 = arith.addf %16, %18 : vector<8x256xf32>
    %cst_17 = arith.constant 0.000000e+00 : f32
    %20 = vector.broadcast %cst_17 : f32 to vector<8x256xf32>
    %21 = arith.maximumf %19, %20 : vector<8x256xf32>
    %c0_18 = arith.constant 0 : index
    %c0_19 = arith.constant 0 : index
    %22 = vector.load %arg8[%c0_18, %c0_19] : memref<256x128xf32, #tpu.memory_space<vmem>>, vector<256x128xf32>
    %cst_20 = arith.constant dense<0.000000e+00> : vector<8x128xf32>
    %23 = tpu.matmul %21, %22, %cst_20 {dimension_numbers = #tpu.dot_dimension_numbers<[1], [0], [0], [1], [0, 0, 1, 1], [], []>} : vector<8x256xf32>, vector<256x128xf32>, vector<8x128xf32> -> vector<8x128xf32>
    %c0_21 = arith.constant 0 : index
    %c0_22 = arith.constant 0 : index
    %24 = vector.load %arg9[%c0_21, %c0_22] : memref<1x128xf32, #tpu.memory_space<vmem>>, vector<1x128xf32>
    %25 = vector.broadcast %24 : vector<1x128xf32> to vector<8x128xf32>
    %26 = arith.addf %23, %25 : vector<8x128xf32>
    %cst_23 = arith.constant 0.000000e+00 : f32
    %27 = vector.broadcast %cst_23 : f32 to vector<8x128xf32>
    %28 = arith.maximumf %26, %27 : vector<8x128xf32>
    %c0_24 = arith.constant 0 : index
    %c0_25 = arith.constant 0 : index
    %29 = vector.load %arg10[%c0_24, %c0_25] : memref<8x128xf32, #tpu.memory_space<vmem>>, vector<8x128xf32>
    tpu.vector_store %arg10[%c0_24, %c0_25], %28 {strides = array<i32>} : memref<8x128xf32, #tpu.memory_space<vmem>>, vector<8x128xf32>,
    return
  }
  func.func @transform_0(%arg0: i32) -> (i32, i32) {
    %c0_i32 = arith.constant 0 : i32
    %c0_i32_0 = arith.constant 0 : i32
    %c0_i32_1 = arith.constant 0 : i32
    return %c0_i32, %c0_i32_0 : i32, i32
  }
  func.func @transform_1(%arg0: i32) -> (i32, i32) {
    %c0_i32 = arith.constant 0 : i32
    %c0_i32_0 = arith.constant 0 : i32
    %c0_i32_1 = arith.constant 0 : i32
    return %c0_i32, %c0_i32_0 : i32, i32
  }
  func.func @transform_2(%arg0: i32) -> (i32, i32) {
    %c0_i32 = arith.constant 0 : i32
    %c0_i32_0 = arith.constant 0 : i32
    %c0_i32_1 = arith.constant 0 : i32
    return %c0_i32, %c0_i32_0 : i32, i32
  }
  func.func @transform_3(%arg0: i32) -> (i32, i32) {
    %c0_i32 = arith.constant 0 : i32
    %c0_i32_0 = arith.constant 0 : i32
    %c0_i32_1 = arith.constant 0 : i32
    return %c0_i32, %c0_i32_0 : i32, i32
  }
  func.func @transform_4(%arg0: i32) -> (i32, i32) {
    %c0_i32 = arith.constant 0 : i32
    %c0_i32_0 = arith.constant 0 : i32
    %c0_i32_1 = arith.constant 0 : i32
    return %c0_i32, %c0_i32_0 : i32, i32
  }
  func.func @transform_5(%arg0: i32) -> (i32, i32) {
    %c0_i32 = arith.constant 0 : i32
    %c0_i32_0 = arith.constant 0 : i32
    %c0_i32_1 = arith.constant 0 : i32
    return %c0_i32, %c0_i32_0 : i32, i32
  }
  func.func @transform_6(%arg0: i32) -> (i32, i32) {
    %c0_i32 = arith.constant 0 : i32
    %c0_i32_0 = arith.constant 0 : i32
    %c0_i32_1 = arith.constant 0 : i32
    return %c0_i32, %c0_i32_0 : i32, i32
  }
  func.func @transform_7(%arg0: i32) -> (i32, i32) {
    %c0_i32 = arith.constant 0 : i32
    %c0_i32_0 = arith.constant 0 : i32
    %c0_i32_1 = arith.constant 0 : i32
    return %c0_i32, %c0_i32_0 : i32, i32
  }
  func.func @transform_8(%arg0: i32) -> (i32, i32) {
    %c0_i32 = arith.constant 0 : i32
    %c0_i32_0 = arith.constant 0 : i32
    %c0_i32_1 = arith.constant 0 : i32
    return %c0_i32, %c0_i32_0 : i32, i32
  }
  func.func @transform_9(%arg0: i32) -> (i32, i32) {
    %c0_i32 = arith.constant 0 : i32
    %c0_i32_0 = arith.constant 0 : i32
    %c0_i32_1 = arith.constant 0 : i32
    return %c0_i32, %c0_i32_0 : i32, i32
  }
}

</mosaic_0001>

<bundles_post_ra>
// kernel: toy_model_forward.1
= control target key start
LH: loop header
LB: loop body
LE: loop exit
PB: predicated region body
PF: predicated region fallthrough
CT: control target
= control target key end

     0   :  { %14 = vsyncpa [#allocation3], 0  ;;  %s1048_s0 = inlined_call_operand.vmem [shape: f32[8,16], index: 0, kind: input, shape index: {}]   ;;  %s1049_s1 = inlined_call_operand.vmem [shape: f32[16,256], index: 1, kind: input, shape index: {}]   ;;  %s1050_s2 = inlined_call_operand.vmem [shape: f32[1,256], index: 2, kind: input, shape index: {}]   ;;  %s1051_s3 = inlined_call_operand.hbm [shape: f32[256,256], index: 3, kind: input, shape index: {}]   ;;  %s1052_s4 = inlined_call_operand.vmem [shape: f32[1,256], index: 4, kind: input, shape index: {}]   ;;  %s1053_s5 = inlined_call_operand.hbm [shape: f32[256,256], index: 5, kind: input, shape index: {}]   ;;  %s1054_s6 = inlined_call_operand.vmem [shape: f32[1,256], index: 6, kind: input, shape index: {}]   ;;  %s1055_s7 = inlined_call_operand.hbm [shape: f32[256,128], index: 7, kind: input, shape index: {}]   ;;  %s1056_s8 = inlined_call_operand.vmem [shape: f32[1,128], index: 8, kind: input, shape index: {}]   ;;  %s1057_s9 = inlined_call_operand.hbm [shape: f32[8,128], index: 9, kind: output, shape index: {}]  }
   0x1   :  { %15 = vsyncpa [#allocation6], 0 }
   0x2   :  { %16 = vsyncpa [#allocation4], 0  ;;  %s897_s30 = smov [#allocation5]   ;;  %s898_s11 = smov [#allocation2]  }
   0x3   :  { %s42_s10 = sshll.u32 %s897_s30, 4  ;;  %s28_s12 = sshll.u32 %s898_s11, 4  ;;  %s43_s10 = int_to_ptr.vmem [resolvable:$true] %s42_s10  ;;  %s956_s12 = int_to_ptr.vmem [resolvable:$true] %s28_s12 }
   0x4   :  { %s803_s15 = scalar_lea.hbm %s1053_s5, 8192 }
   0x5   :  { %p804_p0 = scmp.ne.s32.totalorder %s1053_s5, %s803_s15  ;;  %p807_p1 = scmp.lt.u32.totalorder %s803_s15, %s1053_s5 }
   0x7   :  { %p809_p2 = pnand %p807_p1, %p804_p0 }
   0x9   :  { %812 = shalt.err (!%p809_p2)
}
   0xa   :  { %s813_s20 = scalar_lea.vmem %s43_s10, 8192  ;;  %p818_p4 = scmp.lt.s32.totalorder %s43_s10, %s43_s10 }
   0xb   :  { %p814_p3 = scmp.ne.s32.totalorder %s43_s10, %s813_s20  ;;  %p819_p5 = scmp.lt.s32.totalorder %s813_s20, %s813_s20 }
   0xd   :  { %p820_p6 = por %p819_p5, %p818_p4 }
   0xf   :  { %p821_p7 = pnand %p820_p6, %p814_p3 }
  0x11   :  { %824 = shalt.err (!%p821_p7)
}
  0x12   :  { %s899_s21 = smov 256   ;;  %s900_s22 = smov 16  }
  0x13   :  { %48 = dma.hbm_to_vmem [thread:$0]  %s1053_s5, 8192, %s43_s10, [#allocation6], %s899_s21, %s899_s21, %s900_s22  }
  0x14   :  { %s825_s27 = scalar_lea.hbm %s1051_s3, 8192 }
  0x15   :  { %p826_p8 = scmp.ne.s32.totalorder %s1051_s3, %s825_s27  ;;  %p829_p9 = scmp.lt.u32.totalorder %s825_s27, %s1051_s3 }
  0x17   :  { %p831_p10 = pnand %p829_p9, %p826_p8 }
  0x19   :  { %834 = shalt.err (!%p831_p10)
}
  0x1a   :  { %s835_s13 = scalar_lea.vmem %s956_s12, 8192  ;;  %p840_p12 = scmp.lt.s32.totalorder %s956_s12, %s956_s12 }
  0x1b   :  { %p836_p11 = scmp.ne.s32.totalorder %s956_s12, %s835_s13  ;;  %p841_p13 = scmp.lt.s32.totalorder %s835_s13, %s835_s13 }
  0x1d   :  { %p842_p0 = por %p841_p13, %p840_p12 }
  0x1f   :  { %p843_p1 = pnand %p842_p0, %p836_p11 }
  0x21   :  { %846 = shalt.err (!%p843_p1)
}
  0x22   :  { %34 = dma.hbm_to_vmem [thread:$0]  %s1051_s3, 8192, %s956_s12, [#allocation3], %s899_s21, %s899_s21, %s900_s22  }
  0x23   :  { %s901_s14 = smov [#allocation7]   ;;  %s847_s18 = scalar_lea.hbm %s1055_s7, 4096 }
  0x24   :  { %s56_s15 = sshll.u32 %s901_s14, 4  ;;  %p848_p2 = scmp.ne.s32.totalorder %s1055_s7, %s847_s18  ;;  %s57_s15 = int_to_ptr.vmem [resolvable:$true] %s56_s15 }
  0x25   :  { %p851_p3 = scmp.lt.u32.totalorder %s847_s18, %s1055_s7 }
  0x27   :  { %p853_p4 = pnand %p851_p3, %p848_p2 }
  0x29   :  { %856 = shalt.err (!%p853_p4)
}
  0x2a   :  { %s857_s25 = scalar_lea.vmem %s57_s15, 4096  ;;  %p862_p6 = scmp.lt.s32.totalorder %s57_s15, %s57_s15 }
  0x2b   :  { %p858_p5 = scmp.ne.s32.totalorder %s57_s15, %s857_s25  ;;  %p863_p7 = scmp.lt.s32.totalorder %s857_s25, %s857_s25 }
  0x2d   :  { %p864_p8 = por %p863_p7, %p862_p6 }
  0x2f   :  { %p865_p9 = pnand %p864_p8, %p858_p5 }
  0x31   :  { %868 = shalt.err (!%p865_p9)
}
  0x32   :  { %s902_s3 = smov 128   ;;  %s903_s12 = smov 8  }
  0x33   :  { %62 = dma.hbm_to_vmem [thread:$0]  %s1055_s7, 4096, %s57_s15, [#allocation6], %s902_s3, %s902_s3, %s903_s12  }
  0x34   :  { %891 = dma.done.wait [#allocation3], 8192  }
  0x35   :  { %892 = vsyncadd [#allocation3], 4294959104 }
  0x36   :  { %893 = dma.done.wait [#allocation6], 12288  }
  0x37   :  { %894 = vsyncadd [#allocation6], 4294955008  ;;  %v904_v0 = vmov 0.0   ;;  %v76_v1 = vld [vmem:[%s1049_s1 + $0x8] sm:$0xff]  ;;  %v78_v2 = vld [vmem:[%s1049_s1 + $0x18] sm:$0xff]  ;;  %vm91_vm0 = vcmask 130048  }
  0x38   :  { %159 = vmatprep.mubr.f32.mxu0 %v904_v0  ;;  %v75_v3 = vld [vmem:[%s1049_s1] sm:$0xff]  ;;  %v630_v4 = vpack.c.bf16 %v78_v2, %v76_v1  ;;  %v77_v5 = vld [vmem:[%s1049_s1 + $0x10] sm:$0xff]  ;;  %v169_v6 = vld [vmem:[#allocation2 + $0x8] sm:$0xff] }
  0x39   :  { %v632_v7 = vpack.c.bf16 %v77_v5, %v75_v3  ;;  %v74_v8 = vld [vmem:[%s1048_s0] sm:$0xff]  ;;  %v171_v9 = vld [vmem:[#allocation2 + $0x18] sm:$0xff]  ;;  %v170_v11 = vld [vmem:[#allocation2 + $0x10] sm:$0xff] }
  0x3a   :  { %v168_v10 = vld [vmem:[#allocation2] sm:$0xff]  ;;  %631 = vmatprep.subr.bf16.mxu0 %v630_v4  ;;  %v634_v12 = vpack.c.bf16 %v171_v9, %v169_v6  ;;  %v173_v14 = vld [vmem:[#allocation2 + $0x28] sm:$0xff]  ;;  %v175_v15 = vld [vmem:[#allocation2 + $0x38] sm:$0xff] }
  0x3b   :  { %v636_v13 = vpack.c.bf16 %v170_v11, %v168_v10  ;;  %v172_v16 = vld [vmem:[#allocation2 + $0x20] sm:$0xff]  ;;  %633 = vmatpush1.bf16.msra.mxu0 %v632_v7  ;;  %v638_v17 = vpack.c.bf16 %v175_v15, %v173_v14  ;;  %v174_v18 = vld [vmem:[#allocation2 + $0x30] sm:$0xff]  ;;  %v177_v19 = vld [vmem:[#allocation2 + $0x48] sm:$0xff] }
  0x3c   :  { %v179_v20 = vld [vmem:[#allocation2 + $0x58] sm:$0xff]  ;;  %635 = vmatprep.subr.bf16.mxu1 %v634_v12  ;;  %v640_v21 = vpack.c.bf16 %v174_v18, %v172_v16  ;;  %v176_v23 = vld [vmem:[#allocation2 + $0x40] sm:$0xff]  ;;  %v178_v24 = vld [vmem:[#allocation2 + $0x50] sm:$0xff] }
  0x3d   :  { %637 = vmatpush1.bf16.msra.mxu1 %v636_v13  ;;  %v642_v22 = vpack.c.bf16 %v179_v20, %v177_v19  ;;  %v181_v25 = vld [vmem:[#allocation2 + $0x68] sm:$0xff]  ;;  %v183_v26 = vld [vmem:[#allocation2 + $0x78] sm:$0xff]  ;;  %v644_v27 = vpack.c.bf16 %v178_v24, %v176_v23  ;;  %v180_v29 = vld [vmem:[#allocation2 + $0x60] sm:$0xff] }
  0x3e   :  { %593 = vmatmul.mubr.msk.f32.vlgmr.msra.gmra.mrb[0].mxu0 %vm91_vm0, %v74_v8  ;;  %639 = vmatprep.subr.bf16.mxu1 %v638_v17  ;;  %v646_v28 = vpack.c.bf16 %v183_v26, %v181_v25  ;;  %v182_v30 = vld [vmem:[#allocation2 + $0x70] sm:$0xff]  ;;  %v185_v31 = vld [vmem:[#allocation2 + $0x88] sm:$0xff]  ;;  %v187_v32 = vld [vmem:[#allocation2 + $0x98] sm:$0xff] }
  0x3f   :  { %v648_v33 = vpack.c.bf16 %v182_v30, %v180_v29  ;;  %v650_v34 = vpack.c.bf16 %v187_v32, %v185_v31  ;;  %v184_v35 = vld [vmem:[#allocation2 + $0x80] sm:$0xff]  ;;  %v186_v36 = vld [vmem:[#allocation2 + $0x90] sm:$0xff]  ;;  %v189_v37 = vld [vmem:[#allocation2 + $0xa8] sm:$0xff] }
  0x40   :  { %v191_v38 = vld [vmem:[#allocation2 + $0xb8] sm:$0xff]  ;;  %v652_v39 = vpack.c.bf16 %v186_v36, %v184_v35  ;;  %v188_v41 = vld [vmem:[#allocation2 + $0xa0] sm:$0xff]  ;;  %v190_v42 = vld [vmem:[#allocation2 + $0xb0] sm:$0xff] }
  0x41   :  { %641 = vmatpush1.bf16.msra.mxu1 %v640_v21  ;;  %v654_v40 = vpack.c.bf16 %v191_v38, %v189_v37  ;;  %v193_v43 = vld [vmem:[#allocation2 + $0xc8] sm:$0xff]  ;;  %v195_v44 = vld [vmem:[#allocation2 + $0xd8] sm:$0xff]  ;;  %v656_v45 = vpack.c.bf16 %v190_v42, %v188_v41  ;;  %v192_v47 = vld [vmem:[#allocation2 + $0xc0] sm:$0xff] }
  0x42   :  { %643 = vmatprep.subr.bf16.mxu1 %v642_v22  ;;  %v658_v46 = vpack.c.bf16 %v195_v44, %v193_v43  ;;  %v194_v48 = vld [vmem:[#allocation2 + $0xd0] sm:$0xff]  ;;  %v197_v49 = vld [vmem:[#allocation2 + $0xe8] sm:$0xff]  ;;  %v199_v50 = vld [vmem:[#allocation2 + $0xf8] sm:$0xff] }
  0x43   :  { %v660_v51 = vpack.c.bf16 %v194_v48, %v192_v47  ;;  %v662_v52 = vpack.c.bf16 %v199_v50, %v197_v49  ;;  %v196_v53 = vld [vmem:[#allocation2 + $0xe0] sm:$0xff]  ;;  %v198_v54 = vld [vmem:[#allocation2 + $0xf0] sm:$0xff]  ;;  %v201_v55 = vld [vmem:[#allocation2 + $0x108] sm:$0xff] }
  0x44   :  { %v203_v56 = vld [vmem:[#allocation2 + $0x118] sm:$0xff]  ;;  %v664_v57 = vpack.c.bf16 %v198_v54, %v196_v53  ;;  %v200_v59 = vld [vmem:[#allocation2 + $0x100] sm:$0xff]  ;;  %v202_v60 = vld [vmem:[#allocation2 + $0x110] sm:$0xff] }
  0x45   :  { %645 = vmatpush1.bf16.msra.mxu1 %v644_v27  ;;  %v666_v58 = vpack.c.bf16 %v203_v56, %v201_v55  ;;  %v205_v61 = vld [vmem:[#allocation2 + $0x128] sm:$0xff]  ;;  %v207_v62 = vld [vmem:[#allocation2 + $0x138] sm:$0xff]  ;;  %v668_v63 = vpack.c.bf16 %v202_v60, %v200_v59  ;;  %v204_v1 = vld [vmem:[#allocation2 + $0x120] sm:$0xff] }
  0x46   :  { %647 = vmatprep.subr.bf16.mxu1 %v646_v28  ;;  %v670_v0 = vpack.c.bf16 %v207_v62, %v205_v61  ;;  %v206_v2 = vld [vmem:[#allocation2 + $0x130] sm:$0xff]  ;;  %v209_v3 = vld [vmem:[#allocation2 + $0x148] sm:$0xff]  ;;  %v211_v4 = vld [vmem:[#allocation2 + $0x158] sm:$0xff] }
  0x47   :  { %v672_v5 = vpack.c.bf16 %v206_v2, %v204_v1  ;;  %v674_v6 = vpack.c.bf16 %v211_v4, %v209_v3  ;;  %v208_v7 = vld [vmem:[#allocation2 + $0x140] sm:$0xff]  ;;  %v210_v8 = vld [vmem:[#allocation2 + $0x150] sm:$0xff]  ;;  %v213_v9 = vld [vmem:[#allocation2 + $0x168] sm:$0xff] }
  0x48   :  { %v215_v10 = vld [vmem:[#allocation2 + $0x178] sm:$0xff]  ;;  %v676_v11 = vpack.c.bf16 %v210_v8, %v208_v7  ;;  %v212_v13 = vld [vmem:[#allocation2 + $0x160] sm:$0xff]  ;;  %v214_v14 = vld [vmem:[#allocation2 + $0x170] sm:$0xff] }
  0x49   :  { %649 = vmatpush1.bf16.msra.mxu1 %v648_v33  ;;  %v678_v12 = vpack.c.bf16 %v215_v10, %v213_v9  ;;  %v217_v15 = vld [vmem:[#allocation2 + $0x188] sm:$0xff]  ;;  %v219_v16 = vld [vmem:[#allocation2 + $0x198] sm:$0xff]  ;;  %v680_v17 = vpack.c.bf16 %v214_v14, %v212_v13  ;;  %v216_v19 = vld [vmem:[#allocation2 + $0x180] sm:$0xff] }
  0x4a   :  { %651 = vmatprep.subr.bf16.mxu1 %v650_v34  ;;  %v682_v18 = vpack.c.bf16 %v219_v16, %v217_v15  ;;  %v218_v20 = vld [vmem:[#allocation2 + $0x190] sm:$0xff]  ;;  %v221_v21 = vld [vmem:[#allocation2 + $0x1a8] sm:$0xff]  ;;  %v223_v22 = vld [vmem:[#allocation2 + $0x1b8] sm:$0xff] }
  0x4b   :  { %v684_v23 = vpack.c.bf16 %v218_v20, %v216_v19  ;;  %v686_v24 = vpack.c.bf16 %v223_v22, %v221_v21  ;;  %v220_v25 = vld [vmem:[#allocation2 + $0x1a0] sm:$0xff]  ;;  %v222_v26 = vld [vmem:[#allocation2 + $0x1b0] sm:$0xff]  ;;  %v225_v27 = vld [vmem:[#allocation2 + $0x1c8] sm:$0xff] }
  0x4c   :  { %v227_v28 = vld [vmem:[#allocation2 + $0x1d8] sm:$0xff]  ;;  %v688_v29 = vpack.c.bf16 %v222_v26, %v220_v25  ;;  %v224_v31 = vld [vmem:[#allocation2 + $0x1c0] sm:$0xff]  ;;  %v226_v32 = vld [vmem:[#allocation2 + $0x1d0] sm:$0xff] }
  0x4d   :  { %653 = vmatpush1.bf16.msra.mxu1 %v652_v39  ;;  %v690_v30 = vpack.c.bf16 %v227_v28, %v225_v27  ;;  %v692_v33 = vpack.c.bf16 %v226_v32, %v224_v31  ;;  %v229_v34 = vld [vmem:[#allocation2 + $0x1e8] sm:$0xff]  ;;  %v231_v35 = vld [vmem:[#allocation2 + $0x1f8] sm:$0xff]  ;;  %v228_v37 = vld [vmem:[#allocation2 + $0x1e0] sm:$0xff] }
  0x4e   :  { %655 = vmatprep.subr.bf16.mxu1 %v654_v40  ;;  %v694_v36 = vpack.c.bf16 %v231_v35, %v229_v34  ;;  %v230_v38 = vld [vmem:[#allocation2 + $0x1f0] sm:$0xff]  ;;  %v318_v40 = vld [vmem:[#allocation5 + $0x8] sm:$0xff]  ;;  %v320_v41 = vld [vmem:[#allocation5 + $0x18] sm:$0xff] }
  0x4f   :  { %v696_v39 = vpack.c.bf16 %v230_v38, %v228_v37  ;;  %v317_v42 = vld [vmem:[#allocation5] sm:$0xff]  ;;  %v698_v43 = vpack.c.bf16 %v320_v41, %v318_v40  ;;  %v319_v44 = vld [vmem:[#allocation5 + $0x10] sm:$0xff]  ;;  %v358_v35 = vld [vmem:[#allocation5 + $0x148] sm:$0xff] }
  0x50   :  { %v700_v47 = vpack.c.bf16 %v319_v44, %v317_v42  ;;  %v321_v49 = vld [vmem:[#allocation5 + $0x20] sm:$0xff]  ;;  %v323_v50 = vld [vmem:[#allocation5 + $0x30] sm:$0xff]  ;;  %v362_v41 = vld [vmem:[#allocation5 + $0x168] sm:$0xff] }
  0x51   :  { %657 = vmatpush1.bf16.msra.mxu1 %v656_v45  ;;  %v322_v45 = vld [vmem:[#allocation5 + $0x28] sm:$0xff]  ;;  %699 = vmatprep.subr.bf16.mxu0 %v698_v43  ;;  %v704_v53 = vpack.c.bf16 %v323_v50, %v321_v49  ;;  %v325_v55 = vld [vmem:[#allocation5 + $0x40] sm:$0xff]  ;;  %v327_v56 = vld [vmem:[#allocation5 + $0x50] sm:$0xff] }
  0x52   :  { %659 = vmatprep.subr.bf16.mxu1 %v658_v46  ;;  %v324_v46 = vld [vmem:[#allocation5 + $0x38] sm:$0xff]  ;;  %701 = vmatpush1.bf16.msra.mxu0 %v700_v47  ;;  %v708_v59 = vpack.c.bf16 %v327_v56, %v325_v55  ;;  %v329_v61 = vld [vmem:[#allocation5 + $0x60] sm:$0xff]  ;;  %v331_v62 = vld [vmem:[#allocation5 + $0x70] sm:$0xff] }
  0x53   :  { %v702_v48 = vpack.c.bf16 %v324_v46, %v322_v45  ;;  %v712_v1 = vpack.c.bf16 %v331_v62, %v329_v61  ;;  %v333_v3 = vld [vmem:[#allocation5 + $0x80] sm:$0xff]  ;;  %v335_v4 = vld [vmem:[#allocation5 + $0x90] sm:$0xff]  ;;  %v364_v42 = vld [vmem:[#allocation5 + $0x178] sm:$0xff] }
  0x54   :  { %v716_v7 = vpack.c.bf16 %v335_v4, %v333_v3  ;;  %v337_v9 = vld [vmem:[#allocation5 + $0xa0] sm:$0xff]  ;;  %v339_v10 = vld [vmem:[#allocation5 + $0xb0] sm:$0xff]  ;;  %v742_v44 = vpack.c.bf16 %v364_v42, %v362_v41  ;;  %v366_v47 = vld [vmem:[#allocation5 + $0x188] sm:$0xff] }
  0x55   :  { %661 = vmatpush1.bf16.msra.mxu1 %v660_v51  ;;  %v326_v51 = vld [vmem:[#allocation5 + $0x48] sm:$0xff]  ;;  %703 = vmatprep.subr.bf16.mxu0 %v702_v48  ;;  %v720_v13 = vpack.c.bf16 %v339_v10, %v337_v9  ;;  %v341_v15 = vld [vmem:[#allocation5 + $0xc0] sm:$0xff]  ;;  %v343_v16 = vld [vmem:[#allocation5 + $0xd0] sm:$0xff] }
  0x56   :  { %663 = vmatprep.subr.bf16.mxu1 %v662_v52  ;;  %v328_v52 = vld [vmem:[#allocation5 + $0x58] sm:$0xff]  ;;  %705 = vmatpush1.bf16.msra.mxu0 %v704_v53  ;;  %v724_v19 = vpack.c.bf16 %v343_v16, %v341_v15  ;;  %v345_v21 = vld [vmem:[#allocation5 + $0xe0] sm:$0xff]  ;;  %v347_v22 = vld [vmem:[#allocation5 + $0xf0] sm:$0xff] }
  0x57   :  { %v706_v54 = vpack.c.bf16 %v328_v52, %v326_v51  ;;  %v728_v25 = vpack.c.bf16 %v347_v22, %v345_v21  ;;  %v349_v27 = vld [vmem:[#allocation5 + $0x100] sm:$0xff]  ;;  %v351_v28 = vld [vmem:[#allocation5 + $0x110] sm:$0xff]  ;;  %v368_v48 = vld [vmem:[#allocation5 + $0x198] sm:$0xff] }
  0x58   :  { %v732_v31 = vpack.c.bf16 %v351_v28, %v349_v27  ;;  %v355_v34 = vld [vmem:[#allocation5 + $0x130] sm:$0xff]  ;;  %v361_v45 = vld [vmem:[#allocation5 + $0x160] sm:$0xff]  ;;  %v746_v50 = vpack.c.bf16 %v368_v48, %v366_v47  ;;  %v370_v53 = vld [vmem:[#allocation5 + $0x1a8] sm:$0xff] }
  0x59   :  { %665 = vmatpush1.bf16.msra.mxu1 %v664_v57  ;;  %v330_v57 = vld [vmem:[#allocation5 + $0x68] sm:$0xff]  ;;  %707 = vmatprep.subr.bf16.mxu0 %v706_v54  ;;  %v359_v40 = vld [vmem:[#allocation5 + $0x150] sm:$0xff]  ;;  %v365_v51 = vld [vmem:[#allocation5 + $0x180] sm:$0xff] }
  0x5a   :  { %667 = vmatprep.subr.bf16.mxu1 %v666_v58  ;;  %v332_v58 = vld [vmem:[#allocation5 + $0x78] sm:$0xff]  ;;  %709 = vmatpush1.bf16.msra.mxu0 %v708_v59  ;;  %v363_v46 = vld [vmem:[#allocation5 + $0x170] sm:$0xff]  ;;  %v374_v59 = vld [vmem:[#allocation5 + $0x1c8] sm:$0xff] }
  0x5b   :  { %v710_v60 = vpack.c.bf16 %v332_v58, %v330_v57  ;;  %v744_v49 = vpack.c.bf16 %v363_v46, %v361_v45  ;;  %v367_v52 = vld [vmem:[#allocation5 + $0x190] sm:$0xff]  ;;  %v372_v54 = vld [vmem:[#allocation5 + $0x1b8] sm:$0xff]  ;;  %v369_v57 = vld [vmem:[#allocation5 + $0x1a0] sm:$0xff] }
  0x5c   :  { %v748_v55 = vpack.c.bf16 %v367_v52, %v365_v51  ;;  %v750_v56 = vpack.c.bf16 %v372_v54, %v370_v53  ;;  %v371_v58 = vld [vmem:[#allocation5 + $0x1b0] sm:$0xff]  ;;  %v378_v15 = vld [vmem:[#allocation5 + $0x1e8] sm:$0xff]  ;;  %v380_v16 = vld [vmem:[#allocation5 + $0x1f8] sm:$0xff] }
  0x5d   :  { %669 = vmatpush1.bf16.msra.mxu1 %v668_v63  ;;  %v334_v63 = vld [vmem:[#allocation5 + $0x88] sm:$0xff]  ;;  %711 = vmatprep.subr.bf16.mxu0 %v710_v60  ;;  %v376_v60 = vld [vmem:[#allocation5 + $0x1d8] sm:$0xff]  ;;  %v752_v61 = vpack.c.bf16 %v371_v58, %v369_v57  ;;  %v482_v21 = vld [vmem:[#allocation7 + $0x80] sm:$0xff] }
  0x5e   :  { %671 = vmatprep.subr.bf16.mxu1 %v670_v0  ;;  %v336_v0 = vld [vmem:[#allocation5 + $0x98] sm:$0xff]  ;;  %713 = vmatpush1.bf16.msra.mxu0 %v712_v1  ;;  %v754_v62 = vpack.c.bf16 %v376_v60, %v374_v59  ;;  %v483_v22 = vld [vmem:[#allocation7 + $0x88] sm:$0xff]  ;;  %v472_v42 = vld [vmem:[#allocation7 + $0x30] sm:$0xff] }
  0x5f   :  { %v714_v2 = vpack.c.bf16 %v336_v0, %v334_v63  ;;  %v81_v63 = vlaneseq  ;;  %v485_v27 = vld [vmem:[#allocation7 + $0x98] sm:$0xff]  ;;  %v491_v45 = vld [vmem:[#allocation7 + $0xc8] sm:$0xff]  ;;  %v474_v48 = vld [vmem:[#allocation7 + $0x40] sm:$0xff] }
  0x60   :  { %v493_v51 = vld [vmem:[#allocation7 + $0xd8] sm:$0xff]  ;;  %v476_v54 = vld [vmem:[#allocation7 + $0x50] sm:$0xff]  ;;  %v495_v57 = vld [vmem:[#allocation7 + $0xe8] sm:$0xff] }
  0x61   :  { %673 = vmatpush1.bf16.msra.mxu1 %v672_v5  ;;  %v338_v5 = vld [vmem:[#allocation5 + $0xa8] sm:$0xff]  ;;  %715 = vmatprep.subr.bf16.mxu0 %v714_v2  ;;  %v82_v0 = vshrl.u32 %v81_v63, 7  ;;  %v79_v2 = vld [vmem:[%s1050_s2] sm:$0x3] }
  0x62   :  { %675 = vmatprep.subr.bf16.mxu1 %v674_v6  ;;  %v340_v6 = vld [vmem:[#allocation5 + $0xb8] sm:$0xff]  ;;  %717 = vmatpush1.bf16.msra.mxu0 %v716_v7  ;;  %v232_v60 = vld [vmem:[%s1052_s4] sm:$0x3] }
  0x63   :  { %v718_v8 = vpack.c.bf16 %v340_v6, %v338_v5  ;;  %v1014_v1 = vsub.s32 0, %v82_v0  ;;  %v1019_v3 = vsub.s32 1, %v82_v0 }
  0x65   :  { %677 = vmatpush1.bf16.msra.mxu1 %v676_v11  ;;  %v342_v11 = vld [vmem:[#allocation5 + $0xc8] sm:$0xff]  ;;  %719 = vmatprep.subr.bf16.mxu0 %v718_v8  ;;  %v84_v4 = vrot.slane %v79_v2, %v1014_v1  ;;  %v88_v5 = vrot.slane %v79_v2, %v1019_v3 }
  0x66   :  { %679 = vmatprep.subr.bf16.mxu1 %v678_v12  ;;  %v344_v12 = vld [vmem:[#allocation5 + $0xd8] sm:$0xff]  ;;  %721 = vmatpush1.bf16.msra.mxu0 %v720_v13  ;;  %v375_v13 = vld [vmem:[#allocation5 + $0x1d0] sm:$0xff] }
  0x67   :  { %v722_v14 = vpack.c.bf16 %v344_v12, %v342_v11  ;;  %v373_v12 = vld [vmem:[#allocation5 + $0x1c0] sm:$0xff] }
  0x69   :  { %681 = vmatpush1.bf16.msra.mxu1 %v680_v17  ;;  %v346_v17 = vld [vmem:[#allocation5 + $0xe8] sm:$0xff]  ;;  %723 = vmatprep.subr.bf16.mxu0 %v722_v14  ;;  %v756_v14 = vpack.c.bf16 %v375_v13, %v373_v12  ;;  %v480_v13 = vld [vmem:[#allocation7 + $0x70] sm:$0xff] }
  0x6a   :  { %683 = vmatprep.subr.bf16.mxu1 %v682_v18  ;;  %v348_v18 = vld [vmem:[#allocation5 + $0xf8] sm:$0xff]  ;;  %725 = vmatpush1.bf16.msra.mxu0 %v724_v19  ;;  %v379_v19 = vld [vmem:[#allocation5 + $0x1f0] sm:$0xff] }
  0x6b   :  { %v726_v20 = vpack.c.bf16 %v348_v18, %v346_v17  ;;  %v758_v17 = vpack.c.bf16 %v380_v16, %v378_v15  ;;  %v377_v18 = vld [vmem:[#allocation5 + $0x1e0] sm:$0xff] }
  0x6c   :  { %v381_v16 = vld [vmem:[%s1054_s6] sm:$0x3]  ;;  %s905_s6 = smov [#allocation8]  }
  0x6d   :  { %685 = vmatpush1.bf16.msra.mxu1 %v684_v23  ;;  %v350_v23 = vld [vmem:[#allocation5 + $0x108] sm:$0xff]  ;;  %727 = vmatprep.subr.bf16.mxu0 %v726_v20  ;;  %v760_v20 = vpack.c.bf16 %v379_v19, %v377_v18  ;;  %v390_v18 = vrot.slane %v381_v16, %v1019_v3  ;;  %s583_s18 = sshll.u32 %s905_s6, 4  ;;  %s584_s18 = int_to_ptr.vmem [resolvable:$true] %s583_s18 }
  0x6e   :  { %687 = vmatprep.subr.bf16.mxu1 %v686_v24  ;;  %v352_v24 = vld [vmem:[#allocation5 + $0x118] sm:$0xff]  ;;  %729 = vmatpush1.bf16.msra.mxu0 %v728_v25  ;;  %v467_v25 = vld [vmem:[#allocation7 + $0x8] sm:$0xff]  ;;  %s869_s19 = scalar_lea.vmem %s584_s18, 128  ;;  %p874_p11 = scmp.lt.s32.totalorder %s584_s18, %s584_s18 }
  0x6f   :  { %v730_v26 = vpack.c.bf16 %v352_v24, %v350_v23  ;;  %v466_v23 = vld [vmem:[#allocation7] sm:$0xff]  ;;  %v762_v24 = vpack.c.bf16 %v483_v22, %v482_v21  ;;  %p870_p10 = scmp.ne.s32.totalorder %s584_s18, %s869_s19  ;;  %p875_p12 = scmp.lt.s32.totalorder %s869_s19, %s869_s19 }
  0x70   :  { %v764_v28 = vpack.c.bf16 %v467_v25, %v466_v23 }
  0x71   :  { %689 = vmatpush1.bf16.msra.mxu1 %v688_v29  ;;  %v354_v29 = vld [vmem:[#allocation5 + $0x128] sm:$0xff]  ;;  %731 = vmatprep.subr.bf16.mxu0 %v730_v26  ;;  %v484_v26 = vld [vmem:[#allocation7 + $0x90] sm:$0xff]  ;;  %p876_p13 = por %p875_p12, %p874_p11 }
  0x72   :  { %691 = vmatprep.subr.bf16.mxu1 %v690_v30  ;;  %v356_v30 = vld [vmem:[#allocation5 + $0x138] sm:$0xff]  ;;  %733 = vmatpush1.bf16.msra.mxu0 %v732_v31 }
  0x73   :  { %v734_v32 = vpack.c.bf16 %v356_v30, %v354_v29  ;;  %v766_v29 = vpack.c.bf16 %v485_v27, %v484_v26  ;;  %v468_v30 = vld [vmem:[#allocation7 + $0x10] sm:$0xff]  ;;  %v469_v31 = vld [vmem:[#allocation7 + $0x18] sm:$0xff]  ;;  %v594_v26 = vld [vmem:[%s1056_s8] ss:$0 sm:$0xff]  ;;  %p877_p0 = pnand %p876_p13, %p870_p10 }
  0x75   :  { %693 = vmatpush1.bf16.msra.mxu1 %v692_v33  ;;  %v353_v33 = vld [vmem:[#allocation5 + $0x120] sm:$0xff]  ;;  %735 = vmatprep.subr.bf16.mxu0 %v734_v32 }
  0x76   :  { %695 = vmatprep.subr.bf16.mxu1 %v694_v36  ;;  %v360_v36 = vld [vmem:[#allocation5 + $0x158] sm:$0xff]  ;;  %v736_v37 = vpack.c.bf16 %v355_v34, %v353_v33  ;;  %v486_v32 = vld [vmem:[#allocation7 + $0xa0] sm:$0xff]  ;;  %v487_v33 = vld [vmem:[#allocation7 + $0xa8] sm:$0xff]  ;;  %v768_v34 = vpack.c.bf16 %v469_v31, %v468_v30 }
  0x77   :  { %v738_v38 = vpack.c.bf16 %v360_v36, %v358_v35  ;;  %v770_v35 = vpack.c.bf16 %v487_v33, %v486_v32  ;;  %v470_v36 = vld [vmem:[#allocation7 + $0x20] sm:$0xff] }
  0x78   :  { %737 = vmatpush1.bf16.msra.mxu0 %v736_v37  ;;  %v471_v37 = vld [vmem:[#allocation7 + $0x28] sm:$0xff] }
  0x79   :  { %697 = vmatpush1.bf16.msra.mxu1 %v696_v39  ;;  %v357_v39 = vld [vmem:[#allocation5 + $0x140] sm:$0xff]  ;;  %739 = vmatprep.subr.bf16.mxu0 %v738_v38  ;;  %v488_v38 = vld [vmem:[#allocation7 + $0xb0] sm:$0xff] }
  0x7a   :  { %v740_v43 = vpack.c.bf16 %v359_v40, %v357_v39  ;;  %763 = vmatprep.subr.bf16.mxu1 %v762_v24  ;;  %v489_v39 = vld [vmem:[#allocation7 + $0xb8] sm:$0xff]  ;;  %v772_v40 = vpack.c.bf16 %v471_v37, %v470_v36 }
  0x7b   :  { %v774_v41 = vpack.c.bf16 %v489_v39, %v488_v38 }
  0x7c   :  { %741 = vmatpush1.bf16.msra.mxu0 %v740_v43  ;;  %v473_v43 = vld [vmem:[#allocation7 + $0x38] sm:$0xff] }
  0x7d   :  { %743 = vmatprep.subr.bf16.mxu0 %v742_v44  ;;  %v490_v44 = vld [vmem:[#allocation7 + $0xc0] sm:$0xff]  ;;  %v776_v46 = vpack.c.bf16 %v473_v43, %v472_v42 }
  0x7e   :  { %v778_v47 = vpack.c.bf16 %v491_v45, %v490_v44 }
  0x80   :  { %745 = vmatpush1.bf16.msra.mxu0 %v744_v49  ;;  %v475_v49 = vld [vmem:[#allocation7 + $0x48] sm:$0xff] }
  0x81   :  { %747 = vmatprep.subr.bf16.mxu0 %v746_v50  ;;  %v492_v50 = vld [vmem:[#allocation7 + $0xd0] sm:$0xff]  ;;  %v780_v52 = vpack.c.bf16 %v475_v49, %v474_v48 }
  0x82   :  { %v782_v53 = vpack.c.bf16 %v493_v51, %v492_v50 }
  0x84   :  { %749 = vmatpush1.bf16.msra.mxu0 %v748_v55  ;;  %v477_v55 = vld [vmem:[#allocation7 + $0x58] sm:$0xff] }
  0x85   :  { %751 = vmatprep.subr.bf16.mxu0 %v750_v56  ;;  %v494_v56 = vld [vmem:[#allocation7 + $0xe0] sm:$0xff]  ;;  %v784_v58 = vpack.c.bf16 %v477_v55, %v476_v54 }
  0x86   :  { %v786_v59 = vpack.c.bf16 %v495_v57, %v494_v56 }
  0x88   :  { %753 = vmatpush1.bf16.msra.mxu0 %v752_v61  ;;  %v237_v61 = vrot.slane %v232_v60, %v1014_v1 }
  0x89   :  { %755 = vmatprep.subr.bf16.mxu0 %v754_v62  ;;  %v241_v62 = vrot.slane %v232_v60, %v1019_v3 }
  0x8c   :  { %757 = vmatpush1.bf16.msra.mxu0 %v756_v14  ;;  %v481_v14 = vld [vmem:[#allocation7 + $0x78] sm:$0xff] }
  0x8d   :  { %759 = vmatprep.subr.bf16.mxu0 %v758_v17  ;;  %v792_v15 = vpack.c.bf16 %v481_v14, %v480_v13  ;;  %v386_v17 = vrot.slane %v381_v16, %v1014_v1 }
  0x90   :  { %761 = vmatpush1.bf16.msra.mxu0 %v760_v20 }
 0x111   :  { %v161_v6 = vpop.f32.mrb[0].mxu0 }
 0x112   :  { %v162_v7 = vadd.f32 %v161_v6, %v84_v4  ;;  %v163_v8 = vpop.f32.mrb[1].mxu0 }
 0x113   :  { %v164_v9 = vadd.f32 %v163_v8, %v88_v5  ;;  %v479_v8 = vld [vmem:[#allocation7 + $0x68] sm:$0xff] }
 0x114   :  { %v166_v11 = vmax.f32 %v162_v7, 0.0  ;;  %v478_v7 = vld [vmem:[#allocation7 + $0x60] sm:$0xff] }
 0x115   :  { %v167_v10 = vmax.f32 %v164_v9, 0.0  ;;  %v788_v9 = vpack.c.bf16 %v479_v8, %v478_v7 }
 0x117   :  { %308 = vmatprep.mubr.f32.mxu1 %v167_v10  ;;  %v496_v10 = vld [vmem:[#allocation7 + $0xf0] sm:$0xff] }
 0x118   :  { %309 = vmatmul.mubr.f32.vlgmr.msra.gmra.mrb[0].mxu1 %v166_v11  ;;  %v497_v11 = vld [vmem:[#allocation7 + $0xf8] sm:$0xff] }
 0x119   :  { %765 = vmatpush3.bf16.msra.mxu1 %v764_v28  ;;  %v790_v12 = vpack.c.bf16 %v497_v11, %v496_v10 }
 0x11a   :  { %767 = vmatprep.subr.bf16.mxu1 %v766_v29 }
 0x11d   :  { %769 = vmatpush3.bf16.msra.mxu1 %v768_v34 }
 0x11e   :  { %771 = vmatprep.subr.bf16.mxu1 %v770_v35 }
 0x121   :  { %773 = vmatpush3.bf16.msra.mxu1 %v772_v40 }
 0x122   :  { %775 = vmatprep.subr.bf16.mxu1 %v774_v41 }
 0x125   :  { %777 = vmatpush3.bf16.msra.mxu1 %v776_v46 }
 0x126   :  { %779 = vmatprep.subr.bf16.mxu1 %v778_v47 }
 0x129   :  { %781 = vmatpush3.bf16.msra.mxu1 %v780_v52 }
 0x12a   :  { %783 = vmatprep.subr.bf16.mxu1 %v782_v53 }
 0x12d   :  { %785 = vmatpush3.bf16.msra.mxu1 %v784_v58 }
 0x12e   :  { %787 = vmatprep.subr.bf16.mxu1 %v786_v59 }
 0x131   :  { %789 = vmatpush3.bf16.msra.mxu1 %v788_v9 }
 0x132   :  { %791 = vmatprep.subr.bf16.mxu1 %v790_v12 }
 0x135   :  { %793 = vmatpush3.bf16.msra.mxu1 %v792_v15 }
 0x1eb   :  { %v310_v63 = vpop.f32.mrb[0].mxu1 }
 0x1ec   :  { %v311_v0 = vadd.f32 %v310_v63, %v237_v61  ;;  %v312_v2 = vpop.f32.mrb[1].mxu1 }
 0x1ed   :  { %v313_v4 = vadd.f32 %v312_v2, %v241_v62 }
 0x1ee   :  { %v315_v6 = vmax.f32 %v311_v0, 0.0 }
 0x1ef   :  { %v316_v5 = vmax.f32 %v313_v4, 0.0 }
 0x1f1   :  { %457 = vmatprep.mubr.f32.mxu0 %v316_v5 }
 0x1f2   :  { %458 = vmatmul.mubr.f32.vlgmr.msra.gmra.mrb[2].mxu0 %v315_v6 }
 0x2c5   :  { %v459_v19 = vpop.f32.mrb[2].mxu0 }
 0x2c6   :  { %v460_v20 = vadd.f32 %v459_v19, %v386_v17  ;;  %v461_v21 = vpop.f32.mrb[3].mxu0 }
 0x2c7   :  { %v462_v22 = vadd.f32 %v461_v21, %v390_v18 }
 0x2c8   :  { %v464_v24 = vmax.f32 %v460_v20, 0.0 }
 0x2c9   :  { %v465_v23 = vmax.f32 %v462_v22, 0.0 }
 0x2cb   :  { %569 = vmatprep.mubr.f32.mxu1 %v465_v23 }
 0x2cc   :  { %570 = vmatmul.mubr.f32.vlgmr.msra.gmra.mrb[2].mxu1 %v464_v24 }
 0x39f   :  { %v627_v25 = vpop.f32.mrb[2].mxu1 }
 0x3a0   :  { %v628_v27 = vpop.f32.mrb[3].mxu1 }
 0x3a1   :  { %v629_v28 = vadd.f32 %v628_v27, %v627_v25 }
 0x3a3   :  { %v572_v1 = vadd.f32 %v629_v28, %v594_v26 }
 0x3a5   :  { %v575_v29 = vmax.f32 %v572_v1, 0.0 }
 0x3a7   :  { %576 = vst [vmem:[#allocation8] sm:$0xff] %v575_v29 }
 0x3a8   :  { %880 = shalt.err (!%p877_p0)
}
 0x3a9   :  { %s881_s24 = scalar_lea.hbm %s1057_s9, 128 }
 0x3aa   :  { %p882_p1 = scmp.ne.s32.totalorder %s1057_s9, %s881_s24  ;;  %p885_p2 = scmp.lt.u32.totalorder %s881_s24, %s1057_s9 }
 0x3ac   :  { %p887_p3 = pnand %p885_p2, %p882_p1 }
 0x3ae   :  { %890 = shalt.err (!%p887_p3)
}
 0x3af   :  { %586 = dma.vmem_to_hbm [thread:$0]  %s584_s18, 128, %s1057_s9, [#allocation4]  }
 0x3b0   :  { %895 = dma.done.wait [#allocation4], 128  }
 0x3b1   :  { %896 = vsyncadd [#allocation4], 4294967168 }
 0x3b2   :  { %590 = vsyncpa [#allocation3], 1 }
 0x3b3   :  { %591 = vsyncpa [#allocation6], 1 }
 0x3b4   :  { %592 = vsyncpa [#allocation4], 1 }

</bundles_post_ra>
